<compile_context>
chip_gen: v7x
topology: tpu7x:2x2x1
jax: 0.10.0
libtpu: 0.0.40
codegen_flags: <defaults>
</compile_context>

<pallas_src>
import jax
import jax.numpy as jnp
from jax.experimental import pallas as pl
from jax.experimental.pallas import tpu as pltpu


def _round_up(x, m):
    return ((x + m - 1) // m) * m


def _fused_forecast_kernel(x_ref, w_ref, b_ref, wo_ref, bo_ref, out_ref):
    """One batch-tile of the forecasting model.

    x_ref   [rows, K_pad]   bf16  rows = tile_b*T_f; row = [future_t|past|static]
    w_ref   [K_pad, H_pad]  bf16  stacked [W_f; W_p; W_s], zero padded
    b_ref   [1, H_pad]      f32   b_p + b_s + b_f, zero padded
    wo_ref  [1, H_pad]      f32   output column w_o laid out as a row, zero padded
    bo_ref  [1, 1]          f32
    out_ref [rows, 1]       f32   compact output (no lane padding)
    """
    # Single fused encoder matmul: K is lane-dense (padded to 128), one MXU op.
    h = jnp.dot(x_ref[...], w_ref[...], preferred_element_type=jnp.float32)
    h = jnp.maximum(h + b_ref[...], 0.0)                       # f32 VPU math
    # O == 1 head: VPU multiply + lane reduction instead of a padded MXU head;
    # padded H lanes of h and wo are both zero so they do not contribute.
    out_ref[...] = jnp.sum(h * wo_ref[...], axis=-1, keepdims=True) + bo_ref[...]


def _choose_tiling(B, T_f, K_pad, target_tile_rows):
    """Pick tile_b (batches per grid step) honoring sublane alignment, an even
    tile count when possible (v7x: 2 TensorCores) and a v7x-safe VMEM budget."""
    tile_b = max(1, target_tile_rows // max(T_f, 1))
    if tile_b >= B:
        # Split a would-be single tile in two so both v7x TCs get work
        # (one extra ~0.35 us grid step on single-TC v5e/v6e: negligible).
        tile_b = max(1, -(-B // 2))

    # VMEM budget for the pipelined blocks (double-buffered bf16 input rows +
    # f32 output rows); ~40 MiB keeps headroom inside v7x's 64 MiB VMEM.
    budget = 40 * 1024 * 1024
    per_row = 2 * (K_pad * 2 + 4)
    max_rows = max(8, budget // per_row)
    tile_b = min(tile_b, max(1, max_rows // max(T_f, 1)))

    # rows per tile must stay sublane-aligned (multiple of 8).
    while (tile_b * T_f) % 8:
        tile_b += 1

    B_pad = _round_up(B, tile_b)
    n_tiles = B_pad // tile_b

    # Prefer an even number of tiles (>1) for v7x's two TensorCores.
    if n_tiles > 1 and n_tiles % 2:
        cand = max(1, -(-B // (n_tiles + 1)))
        while (cand * T_f) % 8:
            cand += 1
        cand_pad = _round_up(B, cand)
        if (cand_pad // cand) % 2 == 0:
            tile_b, B_pad, n_tiles = cand, cand_pad, cand_pad // cand

    return tile_b, B_pad, n_tiles


def onnx_model_wrapper_forward(past_data, future_data, static_data, params,
                               *, matmul_dtype=jnp.bfloat16,
                               target_tile_rows=4096):
    """JAX wrapper mimicking ONNXModelWrapper.forward(past, future, static)."""
    B, T_p, F_p = past_data.shape
    _, T_f, F_f = future_data.shape
    F_s = static_data.shape[1]
    H = params['wf'].shape[1]
    O = params['wo'].shape[1]
    # TODO(synk): output head is a VPU lane-reduction; generalize for O > 1.
    assert O == 1, "kernel output head assumes a single output channel"

    K_ctx = T_p * F_p + F_s
    K_in = F_f + K_ctx
    K_pad = _round_up(K_in, 128)
    H_pad = _round_up(H, 128)

    tile_b, B_pad, n_tiles = _choose_tiling(B, T_f, K_pad, target_tile_rows)
    rows_per_tile = tile_b * T_f
    rows_total = B_pad * T_f

    # ---- glue: repack inputs (pure layout, no compute) ----
    ctx = jnp.concatenate([past_data.reshape(B, T_p * F_p), static_data], axis=1)
    x = jnp.concatenate(
        [future_data, jnp.broadcast_to(ctx[:, None, :], (B, T_f, K_ctx))], axis=-1)
    x = x.reshape(B * T_f, K_in)
    x = jnp.pad(x, ((0, rows_total - B * T_f), (0, K_pad - K_in)))
    x = x.astype(matmul_dtype)

    # ---- pack / pad parameters (order matches the x concat: future|past|static) ----
    w_enc = jnp.concatenate([params['wf'], params['wp'], params['ws']], axis=0)
    w_enc = jnp.pad(w_enc, ((0, K_pad - K_in), (0, H_pad - H))).astype(matmul_dtype)
    b_enc = jnp.pad(params['bp'] + params['bs'] + params['bf'],
                    ((0, 0), (0, H_pad - H))).astype(jnp.float32)
    w_o = jnp.pad(params['wo'][:, 0][None, :],
                  ((0, 0), (0, H_pad - H))).astype(jnp.float32)
    b_o = params['bo'].reshape(1, 1).astype(jnp.float32)

    # ---- VMEM limit from the actual per-tile footprint (with headroom) ----
    resident_bytes = K_pad * H_pad * 2 + 2 * H_pad * 4 + 4
    pipelined_bytes = 2 * rows_per_tile * (K_pad * 2 + 4)     # double-buffered
    vmem_limit = int(min(64 * 1024 * 1024,
                         max(8 * 1024 * 1024,
                             2 * (pipelined_bytes + 2 * resident_bytes))))

    # ---- cost estimate for the fused matmul + compact output ----
    flops = 2 * rows_total * K_pad * H_pad + 4 * rows_total * H_pad
    bytes_accessed = int(rows_total * K_pad * 2            # x (bf16)
                         + K_pad * H_pad * 2                # W_enc
                         + 2 * H_pad * 4 + 4                # b_enc, w_o, b_o
                         + rows_total * 4)                  # compact f32 output

    const = lambda i: (0, 0)
    fn = pl.pallas_call(
        _fused_forecast_kernel,
        out_shape=jax.ShapeDtypeStruct((rows_total, 1), jnp.float32),
        grid=(n_tiles,),
        in_specs=[
            pl.BlockSpec((rows_per_tile, K_pad), lambda i: (i, 0)),   # fused rows
            pl.BlockSpec((K_pad, H_pad), const),                      # resident W
            pl.BlockSpec((1, H_pad), const),                          # b_enc
            pl.BlockSpec((1, H_pad), const),                          # w_o row
            pl.BlockSpec((1, 1), const),                              # b_o
        ],
        out_specs=pl.BlockSpec((rows_per_tile, 1), lambda i: (i, 0)),
        compiler_params=pltpu.CompilerParams(
            dimension_semantics=("parallel",),
            vmem_limit_bytes=vmem_limit,
        ),
        cost_estimate=pl.CostEstimate(flops=flops, transcendentals=0,
                                      bytes_accessed=bytes_accessed),
    )
    out_flat = fn(x, w_enc, b_enc, w_o, b_o)
    # Tiny post-call reshape/slice: rows_total * 4 bytes only (compact output).
    return out_flat.reshape(B_pad, T_f, 1)[:B]


def _reference(past_data, future_data, static_data, params,
               cast_dtype=jnp.bfloat16):
    """Pure-JAX reference; encoder operands cast like the kernel's bf16 MXU
    inputs, output head kept in f32 (matching the kernel's VPU head)."""
    def cast(x):
        return x.astype(cast_dtype).astype(jnp.float32) if cast_dtype else x
    B = past_data.shape[0]
    pe = cast(past_data.reshape(B, -1)) @ cast(params['wp'])
    se = cast(static_data) @ cast(params['ws'])
    fe = jnp.einsum('btf,fh->bth', cast(future_data), cast(params['wf']))
    h = jax.nn.relu(fe + pe[:, None, :] + se[:, None, :]
                    + (params['bp'] + params['bs'] + params['bf']))
    return jnp.einsum('bth,ho->bto', h, params['wo']) + params['bo']


def _init_params(key, T_p, F_p, F_f, F_s, H, O):
    ks = jax.random.split(key, 8)
    scale = 0.1
    return {
        'wp': scale * jax.random.normal(ks[0], (T_p * F_p, H), jnp.float32),
        'bp': scale * jax.random.normal(ks[1], (1, H), jnp.float32),
        'wf': scale * jax.random.normal(ks[2], (F_f, H), jnp.float32),
        'bf': scale * jax.random.normal(ks[3], (1, H), jnp.float32),
        'ws': scale * jax.random.normal(ks[4], (F_s, H), jnp.float32),
        'bs': scale * jax.random.normal(ks[5], (1, H), jnp.float32),
        'wo': scale * jax.random.normal(ks[6], (H, O), jnp.float32),
        'bo': scale * jax.random.normal(ks[7], (1, O), jnp.float32),
    }


if __name__ == "__main__":
    # Small shapes consistent with a (past, future, static) forecasting model.
    B, T_p, F_p = 2, 16, 4     # past:   [2, 16, 4]
    T_f, F_f = 8, 4            # future: [2, 8, 4]
    F_s = 6                    # static: [2, 6]
    H, O = 32, 1

    key = jax.random.PRNGKey(0)
    k_past, k_fut, k_stat, k_param = jax.random.split(key, 4)

    past_data = jax.random.normal(k_past, (B, T_p, F_p), jnp.float32)
    future_data = jax.random.normal(k_fut, (B, T_f, F_f), jnp.float32)
    static_data = jax.random.normal(k_stat, (B, F_s), jnp.float32)
    params = _init_params(k_param, T_p, F_p, F_f, F_s, H, O)

    out = onnx_model_wrapper_forward(past_data, future_data, static_data, params)
    out = jax.block_until_ready(out)

    ref = _reference(past_data, future_data, static_data, params,
                     cast_dtype=jnp.bfloat16)
    assert out.shape == (B, T_f, O), out.shape
    assert jnp.allclose(out, ref, atol=2e-3, rtol=2e-3), \
        float(jnp.max(jnp.abs(out - ref)))

    print("KERNEL_OK")
</pallas_src>

<mosaic_0001>
module attributes {stable_mosaic.version = 11 : i64} {
  func.func @_fused_forecast_kernel(%arg0: i32, %arg1: memref<8x128xbf16, #tpu.memory_space<vmem>>, %arg2: memref<128x128xbf16, #tpu.memory_space<vmem>>, %arg3: memref<1x128xf32, #tpu.memory_space<vmem>>, %arg4: memref<1x128xf32, #tpu.memory_space<vmem>>, %arg5: memref<1x1xf32, #tpu.memory_space<vmem>>, %arg6: memref<8x1xf32, #tpu.memory_space<vmem>>) attributes {dimension_semantics = [#tpu.dimension_semantics<parallel>], iteration_bounds = array<i64: 2>, scalar_prefetch = 0 : i64, scratch_operands = 0 : i64, tpu.core_type = #tpu.core_type<tc>, window_params = [{transform_indices = @transform_0, window_bounds = array<i64: 8, 128>}, {pipeline_mode = #tpu.pipeline_mode<synchronous>, transform_indices = @transform_1, window_bounds = array<i64: 128, 128>}, {pipeline_mode = #tpu.pipeline_mode<synchronous>, transform_indices = @transform_2, window_bounds = array<i64: 1, 128>}, {pipeline_mode = #tpu.pipeline_mode<synchronous>, transform_indices = @transform_3, window_bounds = array<i64: 1, 128>}, {pipeline_mode = #tpu.pipeline_mode<synchronous>, transform_indices = @transform_4, window_bounds = array<i64: 1, 1>}, {transform_indices = @transform_5, window_bounds = array<i64: 8, 1>}]} {
    %c0 = arith.constant 0 : index
    %c0_0 = arith.constant 0 : index
    %0 = vector.load %arg1[%c0, %c0_0] : memref<8x128xbf16, #tpu.memory_space<vmem>>, vector<8x128xbf16>
    %c0_1 = arith.constant 0 : index
    %c0_2 = arith.constant 0 : index
    %1 = vector.load %arg2[%c0_1, %c0_2] : memref<128x128xbf16, #tpu.memory_space<vmem>>, vector<128x128xbf16>
    %cst = arith.constant dense<0.000000e+00> : vector<8x128xf32>
    %2 = tpu.matmul %0, %1, %cst {dimension_numbers = #tpu.dot_dimension_numbers<[1], [0], [0], [1], [0, 0, 1, 1], [], []>} : vector<8x128xbf16>, vector<128x128xbf16>, vector<8x128xf32> -> vector<8x128xf32>
    %c0_3 = arith.constant 0 : index
    %c0_4 = arith.constant 0 : index
    %3 = vector.load %arg3[%c0_3, %c0_4] : memref<1x128xf32, #tpu.memory_space<vmem>>, vector<1x128xf32>
    %4 = vector.broadcast %3 : vector<1x128xf32> to vector<8x128xf32>
    %5 = arith.addf %2, %4 : vector<8x128xf32>
    %cst_5 = arith.constant 0.000000e+00 : f32
    %6 = vector.broadcast %cst_5 : f32 to vector<8x128xf32>
    %7 = arith.maximumf %5, %6 : vector<8x128xf32>
    %c0_6 = arith.constant 0 : index
    %c0_7 = arith.constant 0 : index
    %8 = vector.load %arg4[%c0_6, %c0_7] : memref<1x128xf32, #tpu.memory_space<vmem>>, vector<1x128xf32>
    %9 = vector.broadcast %8 : vector<1x128xf32> to vector<8x128xf32>
    %10 = arith.mulf %7, %9 : vector<8x128xf32>
    %cst_8 = arith.constant dense<0.000000e+00> : vector<8xf32>
    %11 = vector.multi_reduction <add>, %10, %cst_8 [1] : vector<8x128xf32> to vector<8xf32>
    %12 = vector.shape_cast %11 : vector<8xf32> to vector<8x1xf32>
    %c0_9 = arith.constant 0 : index
    %c0_10 = arith.constant 0 : index
    %13 = vector.load %arg5[%c0_9, %c0_10] : memref<1x1xf32, #tpu.memory_space<vmem>>, vector<1x1xf32>
    %14 = vector.broadcast %13 : vector<1x1xf32> to vector<8x1xf32>
    %15 = arith.addf %12, %14 : vector<8x1xf32>
    %c0_11 = arith.constant 0 : index
    %c0_12 = arith.constant 0 : index
    %16 = vector.load %arg6[%c0_11, %c0_12] : memref<8x1xf32, #tpu.memory_space<vmem>>, vector<8x1xf32>
    tpu.vector_store %arg6[%c0_11, %c0_12], %15 {strides = array<i32>} : memref<8x1xf32, #tpu.memory_space<vmem>>, vector<8x1xf32>,
    return
  }
  func.func @transform_0(%arg0: i32) -> (i32, i32) {
    %c0_i32 = arith.constant 0 : i32
    %c0_i32_0 = arith.constant 0 : i32
    return %arg0, %c0_i32 : i32, i32
  }
  func.func @transform_1(%arg0: i32) -> (i32, i32) {
    %c0_i32 = arith.constant 0 : i32
    %c0_i32_0 = arith.constant 0 : i32
    %c0_i32_1 = arith.constant 0 : i32
    return %c0_i32, %c0_i32_0 : i32, i32
  }
  func.func @transform_2(%arg0: i32) -> (i32, i32) {
    %c0_i32 = arith.constant 0 : i32
    %c0_i32_0 = arith.constant 0 : i32
    %c0_i32_1 = arith.constant 0 : i32
    return %c0_i32, %c0_i32_0 : i32, i32
  }
  func.func @transform_3(%arg0: i32) -> (i32, i32) {
    %c0_i32 = arith.constant 0 : i32
    %c0_i32_0 = arith.constant 0 : i32
    %c0_i32_1 = arith.constant 0 : i32
    return %c0_i32, %c0_i32_0 : i32, i32
  }
  func.func @transform_4(%arg0: i32) -> (i32, i32) {
    %c0_i32 = arith.constant 0 : i32
    %c0_i32_0 = arith.constant 0 : i32
    %c0_i32_1 = arith.constant 0 : i32
    return %c0_i32, %c0_i32_0 : i32, i32
  }
  func.func @transform_5(%arg0: i32) -> (i32, i32) {
    %c0_i32 = arith.constant 0 : i32
    %c0_i32_0 = arith.constant 0 : i32
    return %arg0, %c0_i32 : i32, i32
  }
}

</mosaic_0001>

<bundles_post_ra>
// kernel: tpu_custom_call.1
= control target key start
LH: loop header
LB: loop body
LE: loop exit
PB: predicated region body
PF: predicated region fallthrough
CT: control target
= control target key end

     0   :  { %s867_s0 = inlined_call_operand.hbm [shape: bf16[16,128], index: 0, kind: input, shape index: {}]   ;;  %s868_s1 = inlined_call_operand.hbm [shape: bf16[128,128], index: 1, kind: input, shape index: {}]   ;;  %s869_s2 = inlined_call_operand.vmem [shape: f32[1,128], index: 2, kind: input, shape index: {}]   ;;  %s870_s3 = inlined_call_operand.vmem [shape: f32[1,128], index: 3, kind: input, shape index: {}]   ;;  %s871_s4 = inlined_call_operand.<no memory space> [shape: f32[1,1], index: 4, kind: input, shape index: {}]   ;;  %s872_s5 = inlined_call_operand.vmem [shape: f32[16,1], index: 5, kind: output, shape index: {}]  }
   0x1   :  { %v10_v0 = vstv %s871_s4 }
   0x2   :  { %11 = vst [vmem:[#allocation2] sm:$0x1] %v10_v0 }
   0x3   :  { %12 = vsyncpa [#allocation4], 0 }
   0x4   :  { %14 = vsyncpa [#allocation4 + $0x1], 0 }
   0x5   :  { %15 = vsyncpa [#allocation6], 0  ;;  %s717_s20 = smov 0   ;;  %s719_s21 = smov 0  }
   0x6   :  { %s721_s22 = smov 0   ;;  %s723_s23 = smov 0  }
   0x7 LB: > { %s736_s4 = sadd.s32 4294967295, %s676_s23   ;;  %p41_p0 = scmp.ne.s32.totalorder %s668_s21, %s664_s20  ;;  %s676_s23 = sphi %s723_s23, %s887_s23   ;;  %s672_s22 = sphi %s721_s22, %s886_s22   ;;  %s668_s21 = sphi %s719_s21, %s885_s21   ;;  %s664_s20 = sphi %s717_s20, %s884_s20  }
   0x8   : > { %p873_p1 = scmp.eq.s32.totalorder %s736_s4, 0  ;;  %p467_p2 = scmp.ge.s32.totalorder %s676_s23, 1 }
   0x9   : > { %p162_p3 = scmp.lt.s32.totalorder %s676_s23, 3  ;;  %s678_s26 = smov [#allocation5]  }
   0xa   : > { %p744_p4 = por %p873_p1, %p41_p0  ;;  %s174_s27 = sshll.u32 %s678_s26, 4  ;;  %s175_s27 = int_to_ptr.vmem [resolvable:$true] %s174_s27 }
   0xb   : > { %p748_p5 = pnand %p467_p2, %p162_p3  ;;  %s761_s29 = sadd.s32 1, %s676_s23  }
   0xc   : > { %s876_s24 = scalar_select %p744_p4, 1, 0 }
   0xd   : > { %s877_s25 = scalar_select %p748_p5, 1, 0 }
   0xe   : > { %p524_p6 = pneg %p748_p5  ;;  %s28_s30 = sadd.s32 1, %s672_s22 }
   0xf   : > { %s25_s6 = ssub.s32 %s676_s23, %s761_s29  ;;  %s580_s9 = scalar_lea.hbm %s868_s1, 1024 }
  0x10   : > { %p756_p7 = pnand %p524_p6, %p873_p1  ;;  %p581_p8 = scmp.ne.s32.totalorder %s868_s1, %s580_s9 }
  0x11   : > { %p587_p12 = scmp.lt.u32.totalorder %s580_s9, %s868_s1 }
  0x12   : > { %p582_p9 = pneg %p756_p7 }
  0x14   : > { %p583_p10 = pnand %p582_p9, %p581_p8 }
  0x16   : > { %p584_p11 = pneg %p583_p10 }
  0x18   : > { %p589_p13 = pnand %p587_p12, %p584_p11 }
  0x1a   : > { %592 = shalt.err (!%p589_p13)
}
  0x1b   : > { %s593_s14 = scalar_lea.vmem %s175_s27, 1024  ;;  %p601_p6 = scmp.lt.s32.totalorder %s175_s27, %s175_s27 }
  0x1c   : > { %p594_p0 = scmp.ne.s32.totalorder %s175_s27, %s593_s14  ;;  %p602_p1 = scmp.lt.s32.totalorder %s593_s14, %s593_s14 }
  0x1e   : > { %p596_p2 = pnand %p594_p0, %p582_p9  ;;  %p603_p4 = por %p602_p1, %p601_p6 }
  0x20   : > { %p597_p3 = pneg %p596_p2 }
  0x22   : > { %p604_p5 = pnand %p603_p4, %p597_p3 }
  0x24   : > { %607 = shalt.err (!%p604_p5)
}
  0x25   : > { %s679_s15 = smov 64   ;;  %s680_s16 = smov 4  }
  0x26   : > { %527 = dma.hbm_to_vmem [thread:$0]  (!%p756_p7), %s868_s1, 1024, %s175_s27, [#allocation6], %s679_s15, %s679_s15, %s680_s16  }
  0x27   : > { %p26_p8 = scmp.eq.s32.totalorder %s25_s6, 0  ;;  %p35_p9 = scmp.ne.s32.totalorder %s672_s22, %s668_s21 }
  0x28   : > { %p36_p1 = scmp.eq.s32.totalorder %s676_s23, 0  ;;  %p533_p4 = scmp.lt.s32.totalorder %s676_s23, 2 }
  0x29   : > { %s787_s19 = scalar_select %p26_p8, %s672_s22, %s28_s30  }
  0x2a   : > { %p37_p5 = por %p36_p1, %p35_p9  ;;  %s197_s20 = sand.u32 1, %s672_s22  }
  0x2b   : > { %s470_s26 = sshll.u32 %s197_s20, 2  ;;  %s471_s7 = sshll.u32 %s676_s23, 6 }
  0x2c   : > { %s794_s10 = scalar_lea.hbm %s867_s0, %s471_s7  ;;  %s201_s27 = scalar_lea.vmem [#allocation3], %s470_s26 }
  0x2d   : > { %s208_s28 = sshll.u32 %s201_s27, 4  ;;  %p798_p7 = pnand %p533_p4, %p37_p5  ;;  %s796_s28 = int_to_ptr.vmem [resolvable:$true] %s208_s28 }
  0x2e   : > { %s198_s23 = scalar_lea.sflag [#allocation4], %s197_s20  ;;  %s608_s6 = scalar_lea.hbm %s794_s10, 64 }
  0x2f   : > { %p609_p10 = scmp.ne.s32.totalorder %s794_s10, %s608_s6  ;;  %p610_p11 = pneg %p798_p7 }
  0x30   : > { %s613_s13 = scalar_lea.hbm %s867_s0, 128  ;;  %p614_p0 = scmp.lt.u32.totalorder %s794_s10, %s867_s0 }
  0x31   : > { %p611_p12 = pnand %p610_p11, %p609_p10  ;;  %p615_p2 = scmp.lt.u32.totalorder %s613_s13, %s608_s6 }
  0x32   : > { %p617_p6 = scmp.lt.u32.totalorder %s608_s6, %s794_s10 }
  0x33   : > { %p612_p13 = pneg %p611_p12  ;;  %p616_p3 = por %p615_p2, %p614_p0 }
  0x35   : > { %p618_p8 = por %p617_p6, %p616_p3 }
  0x37   : > { %p619_p9 = pnand %p618_p8, %p612_p13 }
  0x39   : > { %622 = shalt.err (!%p619_p9)
}
  0x3a   : > { %s623_s16 = scalar_lea.vmem %s796_s28, 64  ;;  %s681_s17 = smov [#allocation3]  }
  0x3b   : > { %p624_p1 = scmp.ne.s32.totalorder %s796_s28, %s623_s16  ;;  %s628_s18 = sshll.u32 %s681_s17, 4  ;;  %s629_s18 = int_to_ptr.vmem [resolvable:$false] %s628_s18 }
  0x3c   : > { %s630_s20 = scalar_lea.vmem %s629_s18, 128  ;;  %p631_p10 = scmp.lt.s32.totalorder %s796_s28, %s629_s18 }
  0x3d   : > { %p626_p4 = pnand %p624_p1, %p610_p11  ;;  %p632_p12 = scmp.lt.s32.totalorder %s630_s20, %s623_s16 }
  0x3f   : > { %p627_p5 = pneg %p626_p4  ;;  %p633_p0 = por %p632_p12, %p631_p10 }
  0x41   : > { %p634_p2 = pnand %p633_p0, %p627_p5 }
  0x43   : > { %637 = shalt.err (!%p634_p2)
}
  0x44   : > { %531 = dma.hbm_to_vmem [thread:$0]  (!%p798_p7), %s794_s10, 64, %s796_s28, %s198_s23  }
  0x45   : > { %p880_p13 = scmp.ne.s32.totalorder %s877_s25, 0 }
  0x46   : > { %s219_s26 = sand.u32 (!%p880_p13), 1, %s668_s21   ;;  %p881_p11 = scmp.ne.s32.totalorder (!%p880_p13), %s876_s24, 0 }
  0x47   : > { %217 = sbr.rel (%p880_p13) target bundleno = 478 (0x1de), region = 40  ;;  %s830_s7 = sshll.u32 (!%p880_p13), %s219_s26, 2 }
  0x48   : > { %s220_s8 = scalar_lea.sflag (!%p880_p13), [#allocation4], %s219_s26  ;;  %s223_s9 = scalar_lea.vmem (!%p880_p13), [#allocation3], %s830_s7 }
  0x4e   : > { %655 = dma.done.wait (%p881_p11), %s220_s8, 64  }
  0x4f   : > { %657 = vsyncadd (%p881_p11), %s220_s8, 4294967232  ;;  %p882_p3 = scmp.eq.s32.totalorder %s736_s4, 0 }
  0x51   : > { %659 = dma.done.wait (%p882_p3), [#allocation6], 1024   ;;  %p883_p7 = pmov %p882_p3 }
  0x52   : > { %v682_v1 = vmov 0.0   ;;  %vm683_vm0 = vmmov 0   ;;  %v572_v2 = vld [vmem:[#allocation5] sm:$0xff]   ;;  %v573_v3 = vld [vmem:[#allocation5 + $0x8] sm:$0xff]   ;;  %v574_v4 = vld [vmem:[#allocation5 + $0x10] sm:$0xff]   ;;  %p253_p6 = scmp.lt.s32.totalorder %s736_s4, 1 }
  0x53   : > { %661 = vsyncadd (%p883_p7), [#allocation6], 4294966272  ;;  %498 = vmatprep.subr.bf16.mxu0 %v682_v1  ;;  %514 = vmatprep.mubr.msk.bf16.mxu0 %vm683_vm0, %v682_v1  ;;  %v575_v5 = vld [vmem:[#allocation5 + $0x18] sm:$0xff]   ;;  %v576_v6 = vld [vmem:[#allocation5 + $0x20] sm:$0xff]   ;;  %vm389_vm1 = vcmask 7168  }
  0x54   : > { %499 = vmatpush3.bf16.msra.mxu0 %v572_v2  ;;  %v577_v7 = vld [vmem:[#allocation5 + $0x28] sm:$0xff]   ;;  %v578_v8 = vld [vmem:[#allocation5 + $0x30] sm:$0xff]   ;;  %v579_v9 = vld [vmem:[#allocation5 + $0x38] sm:$0xff]   ;;  %s889_s4 = smov (!%p253_p6, %s736_s4), 1 }
  0x55   : > { %500 = vmatprep.subr.bf16.mxu0 %v682_v1  ;;  %v258_v10 = vld [vmem:[%s223_s9] sm:$0xf]  ;;  %v476_v11 = vld [vmem:[%s869_s2] ss:$0 sm:$0xff]  ;;  %s475_s28 = sshll.u32 %s889_s4, 3 }
  0x56   : > { %v485_v16 = vld [vmem:[%s870_s3] ss:$0 sm:$0xff]  ;;  %s256_s6 = scalar_lea.vmem %s872_s5, %s475_s28 }
  0x57   : > { %v486_v20 = vld [vmem:[#allocation2] ss:$0 sm:$0xff] }
  0x58   : > { %501 = vmatpush3.bf16.msra.mxu0 %v573_v3 }
  0x59   : > { %502 = vmatprep.subr.bf16.mxu0 %v682_v1 }
  0x5c   : > { %503 = vmatpush3.bf16.msra.mxu0 %v574_v4 }
  0x5d   : > { %504 = vmatprep.subr.bf16.mxu0 %v682_v1 }
  0x60   : > { %505 = vmatpush3.bf16.msra.mxu0 %v575_v5 }
  0x61   : > { %506 = vmatprep.subr.bf16.mxu0 %v682_v1 }
  0x64   : > { %507 = vmatpush3.bf16.msra.mxu0 %v576_v6 }
  0x65   : > { %508 = vmatprep.subr.bf16.mxu0 %v682_v1 }
  0x68   : > { %509 = vmatpush3.bf16.msra.mxu0 %v577_v7 }
  0x69   : > { %510 = vmatprep.subr.bf16.mxu0 %v682_v1 }
  0x6c   : > { %511 = vmatpush3.bf16.msra.mxu0 %v578_v8 }
  0x6d   : > { %512 = vmatprep.subr.bf16.mxu0 %v682_v1 }
  0x70   : > { %513 = vmatpush3.bf16.msra.mxu0 %v579_v9 }
  0x73   : > { %515 = vmatmul.mubr.bf16.vlgmr.msra.gmra.mrb[0].mxu0 %v258_v10 }
 0x146   : > { %v364_v12 = vpop.f32.mrb[0].mxu0 }
 0x147   : > { %v365_v13 = vadd.f32 %v476_v11, %v364_v12  ;;  %v516_v14 = vpop.f32.mrb[1].mxu0 }
 0x148   : > { %v367_v15 = vpop.f32.mrb[2].mxu0 }
 0x149   : > { %v370_v17 = vmax.f32 %v365_v13, 0.0  ;;  %v517_v18 = vpop.f32.mrb[3].mxu0 }
 0x14b   : > { %v378_v19 = vmul.f32 %v485_v16, %v370_v17 }
 0x14d   : > { %379 = vadd.xlane.f32.xlu0 %v378_v19 }
 0x1da   : > { %v380_v21 = vpop.xlane.xlu0 %379 }
 0x1db   : > { %v388_v22 = vadd.f32 %v486_v20, %v380_v21 }
 0x1dd   : > { %390 = vst.msk [vmem:[%s256_s6] sm:$0xff] %vm389_vm1, %v388_v22 }
 0x1de PF: > { %p18_p8 = scmp.ge.s32.totalorder %s761_s29, 4   ;;  %s884_s20 = smov %s668_s21 }
 0x1df   : > { %s885_s21 = smov %s672_s22  ;;  %s886_s22 = smov %s787_s19 }
 0x1e0   : > { %s887_s23 = smov %s761_s29  ;;  %20 = sbr.rel (!%p18_p8) target bundleno = 7 (0x7), region = 84 }
 0x1e7   :  { %410 = vsyncpa [#allocation4], 1 }
 0x1e8   :  { %412 = vsyncpa [#allocation4 + $0x1], 1 }
 0x1e9   :  { %413 = vsyncpa [#allocation6], 1 }

</bundles_post_ra>
